<compile_context>
chip_gen: v5e
topology: v5e:2x2
jax: 0.10.0
libtpu: 0.0.40
codegen_flags: <defaults>
</compile_context>

<pallas_src>
import numpy as np
import jax
import jax.numpy as jnp
from jax.experimental import pallas as pl
from jax.experimental.pallas import tpu as pltpu


def _convtranspose_bn_silu_kernel(x_ref, w_ref, b_ref, o_ref):
    # x_ref: (1, C1, TM)  f32  input block, flattened-spatial tile on lanes (lane-dense)
    # w_ref: (KC2, C1)    bf16 BN-scale-folded packed weight, rows ordered (co, di, dj)
    # b_ref: (KC2, 1)     f32  folded BatchNorm shift
    # o_ref: (1, KC2, TM) f32  output block
    x = x_ref[0].astype(jnp.bfloat16)            # bf16 operands -> full-rate MXU (f32 accum)
    y = jnp.dot(w_ref[...], x, preferred_element_type=jnp.float32)   # (KC2, TM)
    y = y + b_ref[...]                           # BN shift (scale already folded into w)
    # SiLU = y * sigmoid(y); exp on the EUP, approx reciprocal keeps the divide cheap.
    o_ref[0] = (y * pl.reciprocal(1.0 + jnp.exp(-y), approx=True)).astype(o_ref.dtype)


def _choose_tile(HW, N, c1, kc2):
    """Pick the flattened-spatial tile TM (multiple of 128, or the full HW)."""
    bytes_per_col = 2 * (c1 + kc2) * 4          # double-buffered f32 in+out blocks per column
    budget = 40 << 20                           # conservative vs v7x's 64 MiB physical VMEM
    cap = max(128, min(4096, (budget // bytes_per_col) // 128 * 128))
    if HW <= cap:
        if N >= 4 or HW < 512:
            return HW                           # whole image per step (full-dim block is legal)
        # Batch alone gives too few grid steps -> split spatially for pipelining / megacore.
        ntiles = max(2, 8 // max(N, 1))
        return max(128, ((HW // ntiles) // 128) * 128)
    return cap


def conv_transpose_bn_silu(x, weight, gamma, beta, running_mean, running_var,
                           eps=1e-5, k=2, s=2, p=0):
    """x: (N, C1, H, W) f32 NCHW; weight: (C1, C2, k, k) (PyTorch ConvTranspose2d layout);
    gamma/beta/running_mean/running_var: (C2,) BatchNorm2d inference parameters."""
    assert k == s and p == 0, "only the non-overlapping (k == s, p == 0) default config"
    # TODO(synk): general k/s/p (overlapping transposed-conv windows) and train-mode BatchNorm
    # (batch statistics) are not implemented; inference running stats are used.
    N, C1, H, W = x.shape
    wc1, C2, kH, kW = weight.shape
    assert wc1 == C1 and kH == k and kW == k
    HW = H * W
    KC2 = kH * kW * C2

    # Fold BatchNorm (inference) into a per-output-channel scale/shift.
    scale = gamma / jnp.sqrt(running_var + eps)                     # (C2,)
    shift = beta - running_mean * scale                             # (C2,)

    # Pack weight: (C1, C2, kH, kW) -> rows (co, di, dj) x cols (ci); fold the BN scale in.
    w_packed = (weight * scale[None, :, None, None]).transpose(1, 2, 3, 0).reshape(KC2, C1)
    w_packed = w_packed.astype(jnp.bfloat16)
    b_packed = jnp.repeat(shift, kH * kW).reshape(KC2, 1).astype(jnp.float32)

    # Lane-dense layout: NCHW -> (N, C1, H*W) is a free reshape (no HBM pass).  The spatial
    # axis is NOT padded: the last (ragged) grid block may read a few undefined lanes (they
    # never contaminate valid lanes) and its out-of-bounds stores are masked by Pallas.
    x_flat = x.reshape(N, C1, HW)

    TM = _choose_tile(HW, N, C1, KC2)
    grid = (N, pl.cdiv(HW, TM))

    # VMEM actually needed (double-buffered in/out blocks + weight/shift) with headroom,
    # kept below v7x's 64 MiB physical VMEM (v5e/v6e have 128 MiB and a 16/32 MiB default
    # scoped limit, so the explicit limit matters there too).
    block_bytes = 2 * (C1 + KC2) * TM * 4 + KC2 * C1 * 2 + KC2 * 4
    vmem_limit = int(min(60 << 20, max(32 << 20, block_bytes + (8 << 20))))

    cost = pl.CostEstimate(
        flops=2 * N * KC2 * C1 * HW,
        transcendentals=N * KC2 * HW,
        bytes_accessed=4 * N * (C1 + KC2) * HW + 2 * KC2 * C1 + 4 * KC2,
    )

    y = pl.pallas_call(
        _convtranspose_bn_silu_kernel,
        out_shape=jax.ShapeDtypeStruct((N, KC2, HW), x.dtype),
        grid_spec=pltpu.PrefetchScalarGridSpec(
            num_scalar_prefetch=0,
            grid=grid,
            in_specs=[
                pl.BlockSpec((1, C1, TM), lambda n, m: (n, 0, m)),   # x block
                pl.BlockSpec((KC2, C1), lambda n, m: (0, 0)),        # packed weight (bf16)
                pl.BlockSpec((KC2, 1), lambda n, m: (0, 0)),         # BN shift
            ],
            out_specs=pl.BlockSpec((1, KC2, TM), lambda n, m: (n, 0, m)),
        ),
        compiler_params=pltpu.CompilerParams(
            dimension_semantics=("parallel", "parallel"),
            vmem_limit_bytes=vmem_limit),
        cost_estimate=cost,
    )(x_flat, w_packed, b_packed)

    # depth_to_space (2x2 pixel shuffle) back to NCHW.  Rows are (co, di, dj), so the permute
    # keeps (N, C2) major and only shuffles within each channel plane.
    # TODO(synk): folding this depth_to_space into the kernel's output store needs an
    # in-kernel lane-interleave (stretch) relayout; kept wrapper-side for robust lowering.
    y = y.reshape(N, C2, kH, kW, H, W)
    y = y.transpose(0, 1, 4, 2, 5, 3).reshape(N, C2, H * kH, W * kW)
    return y


def _reference(x, weight, gamma, beta, running_mean, running_var, eps=1e-5, s=2):
    """Pure-JAX reference mirroring the PyTorch forward (eval mode)."""
    C1, C2, kH, kW = weight.shape
    w_conv = jnp.flip(weight, axis=(2, 3)).transpose(1, 0, 2, 3)    # (C2, C1, kH, kW)
    y = jax.lax.conv_general_dilated(
        x, w_conv, window_strides=(1, 1),
        padding=((kH - 1, kH - 1), (kW - 1, kW - 1)),
        lhs_dilation=(s, s),
        dimension_numbers=("NCHW", "OIHW", "NCHW"),
        precision=jax.lax.Precision.HIGHEST)
    scale = gamma / jnp.sqrt(running_var + eps)
    shift = beta - running_mean * scale
    y = y * scale[None, :, None, None] + shift[None, :, None, None]
    return y * jax.nn.sigmoid(y)


if __name__ == "__main__":
    key = jax.random.PRNGKey(0)
    kx, kw, kg, kb, km, kv = jax.random.split(key, 6)

    N, C1, C2, H, W = 2, 32, 16, 16, 16
    K = 2
    x = jax.random.normal(kx, (N, C1, H, W), dtype=jnp.float32)

    # Deterministic ConvTranspose2d(C1, C2, 2, 2, bias=False) weight (kaiming-uniform-like).
    fan_in = C2 * K * K
    bound = 1.0 / np.sqrt(fan_in)
    weight = jax.random.uniform(kw, (C1, C2, K, K), minval=-bound, maxval=bound,
                                dtype=jnp.float32)

    # BatchNorm2d inference parameters.
    gamma = jax.random.uniform(kg, (C2,), minval=0.5, maxval=1.5, dtype=jnp.float32)
    beta = 0.1 * jax.random.normal(kb, (C2,), dtype=jnp.float32)
    running_mean = 0.1 * jax.random.normal(km, (C2,), dtype=jnp.float32)
    running_var = jax.random.uniform(kv, (C2,), minval=0.5, maxval=1.5, dtype=jnp.float32)

    fwd = jax.jit(conv_transpose_bn_silu)
    out = jax.block_until_ready(fwd(x, weight, gamma, beta, running_mean, running_var))

    ref = _reference(x, weight, gamma, beta, running_mean, running_var)
    assert out.shape == (N, C2, 2 * H, 2 * W)
    # Tolerance covers the intentional bf16 MXU operands (f32 accumulation).
    np.testing.assert_allclose(np.asarray(out), np.asarray(ref), atol=1e-2, rtol=1e-2)
    print("KERNEL_OK")
</pallas_src>

<mosaic_0001>
module attributes {stable_mosaic.version = 11 : i64} {
  func.func @_convtranspose_bn_silu_kernel(%arg0: i32, %arg1: i32, %arg2: memref<1x32x256xf32, #tpu.memory_space<vmem>>, %arg3: memref<64x32xbf16, #tpu.memory_space<vmem>>, %arg4: memref<64x1xf32, #tpu.memory_space<vmem>>, %arg5: memref<1x64x256xf32, #tpu.memory_space<vmem>>) attributes {dimension_semantics = [#tpu.dimension_semantics<parallel>, #tpu.dimension_semantics<parallel>], iteration_bounds = array<i64: 2, 1>, scalar_prefetch = 0 : i64, scratch_operands = 0 : i64, tpu.core_type = #tpu.core_type<tc>, window_params = [{transform_indices = @transform_0, window_bounds = array<i64: 1, 32, 256>}, {pipeline_mode = #tpu.pipeline_mode<synchronous>, transform_indices = @transform_1, window_bounds = array<i64: 64, 32>}, {pipeline_mode = #tpu.pipeline_mode<synchronous>, transform_indices = @transform_2, window_bounds = array<i64: 64, 1>}, {transform_indices = @transform_3, window_bounds = array<i64: 1, 64, 256>}]} {
    %c0 = arith.constant 0 : index
    %c0_0 = arith.constant 0 : index
    %c0_1 = arith.constant 0 : index
    %0 = vector.load %arg2[%c0, %c0_0, %c0_1] : memref<1x32x256xf32, #tpu.memory_space<vmem>>, vector<1x32x256xf32>
    %1 = vector.shape_cast %0 : vector<1x32x256xf32> to vector<32x256xf32>
    %2 = arith.truncf %1 : vector<32x256xf32> to vector<32x256xbf16>
    %c0_2 = arith.constant 0 : index
    %c0_3 = arith.constant 0 : index
    %3 = vector.load %arg3[%c0_2, %c0_3] : memref<64x32xbf16, #tpu.memory_space<vmem>>, vector<64x32xbf16>
    %cst = arith.constant dense<0.000000e+00> : vector<64x256xf32>
    %4 = tpu.matmul %3, %2, %cst {dimension_numbers = #tpu.dot_dimension_numbers<[1], [0], [0], [1], [0, 0, 1, 1], [], []>} : vector<64x32xbf16>, vector<32x256xbf16>, vector<64x256xf32> -> vector<64x256xf32>
    %c0_4 = arith.constant 0 : index
    %c0_5 = arith.constant 0 : index
    %5 = vector.load %arg4[%c0_4, %c0_5] : memref<64x1xf32, #tpu.memory_space<vmem>>, vector<64x1xf32>
    %6 = vector.broadcast %5 : vector<64x1xf32> to vector<64x256xf32>
    %7 = arith.addf %4, %6 : vector<64x256xf32>
    %cst_6 = arith.constant 0.000000e+00 : f32
    %8 = vector.broadcast %cst_6 : f32 to vector<64x256xf32>
    %9 = arith.subf %8, %7 : vector<64x256xf32>
    %10 = math.exp %9 : vector<64x256xf32>
    %cst_7 = arith.constant 1.000000e+00 : f32
    %11 = vector.broadcast %cst_7 : f32 to vector<64x256xf32>
    %12 = arith.addf %11, %10 : vector<64x256xf32>
    %13 = tpu.reciprocal %12 {approx = true} : vector<64x256xf32> -> vector<64x256xf32>
    %14 = arith.mulf %7, %13 : vector<64x256xf32>
    %c0_8 = arith.constant 0 : index
    %c0_9 = arith.constant 0 : index
    %c0_10 = arith.constant 0 : index
    %15 = vector.load %arg5[%c0_8, %c0_9, %c0_10] : memref<1x64x256xf32, #tpu.memory_space<vmem>>, vector<1x64x256xf32>
    %16 = vector.shape_cast %15 : vector<1x64x256xf32> to vector<64x256xf32>
    %17 = vector.shape_cast %14 : vector<64x256xf32> to vector<1x64x256xf32>
    tpu.vector_store %arg5[%c0_8, %c0_9, %c0_10], %17 {strides = array<i32>} : memref<1x64x256xf32, #tpu.memory_space<vmem>>, vector<1x64x256xf32>,
    return
  }
  func.func @transform_0(%arg0: i32, %arg1: i32) -> (i32, i32, i32) {
    %c0_i32 = arith.constant 0 : i32
    %c0_i32_0 = arith.constant 0 : i32
    return %arg0, %c0_i32, %arg1 : i32, i32, i32
  }
  func.func @transform_1(%arg0: i32, %arg1: i32) -> (i32, i32) {
    %c0_i32 = arith.constant 0 : i32
    %c0_i32_0 = arith.constant 0 : i32
    %c0_i32_1 = arith.constant 0 : i32
    return %c0_i32, %c0_i32_0 : i32, i32
  }
  func.func @transform_2(%arg0: i32, %arg1: i32) -> (i32, i32) {
    %c0_i32 = arith.constant 0 : i32
    %c0_i32_0 = arith.constant 0 : i32
    %c0_i32_1 = arith.constant 0 : i32
    return %c0_i32, %c0_i32_0 : i32, i32
  }
  func.func @transform_3(%arg0: i32, %arg1: i32) -> (i32, i32, i32) {
    %c0_i32 = arith.constant 0 : i32
    %c0_i32_0 = arith.constant 0 : i32
    return %arg0, %c0_i32, %arg1 : i32, i32, i32
  }
}

</mosaic_0001>

<bundles_post_ra>
// kernel: conv_transpose_bn_silu.1
= control target key start
LH: loop header
LB: loop body
LE: loop exit
PB: predicated region body
PF: predicated region fallthrough
CT: control target
= control target key end

     0   :  { %s751_s12 = smov 0   ;;  %s753_s13 = smov 0   ;;  %s914_s0 = inlined_call_operand.vmem [shape: f32[2,32,256], index: 0, kind: input, shape index: {}]   ;;  %s915_s1 = inlined_call_operand.vmem [shape: bf16[64,32], index: 1, kind: input, shape index: {}]   ;;  %s916_s2 = inlined_call_operand.vmem [shape: f32[64,1], index: 2, kind: input, shape index: {}]   ;;  %s917_s3 = inlined_call_operand.vmem [shape: f32[2,64,256], index: 3, kind: output, shape index: {}]  }
   0x1   :  { %s755_s14 = smov 0  }
   0x2 LB: > { %s25_s15 = sadd.s32 1, %s724_s13  ;;  %p573_p0 = scmp.ge.s32.totalorder %s728_s14, 1  ;;  %s728_s14 = sphi %s755_s14, %s13_s14   ;;  %s724_s13 = sphi %s753_s13, %s919_s13   ;;  %s720_s12 = sphi %s751_s12, %s918_s12  }
   0x3   : > { %p27_p1 = scmp.ge.s32.totalorder %s25_s15, 2  ;;  %p158_p2 = scmp.lt.s32.totalorder %s728_s14, 3 }
   0x5   : > { %s921_s15 = smov (%p27_p1, %s25_s15), 0  ;;  %p159_p3 = pnand %p573_p0, %p158_p2 }
   0x6   : > { %p191_p4 = scmp.lt.s32.totalorder (!%p159_p3), %s720_s12, 1 }
   0x7   : > { %162 = sbr.rel (%p159_p3) target bundleno = 214 (0xd6), region = 32 }
   0xc   : > { %v233_v0 = vld [vmem:[%s916_s2 + $0x10] sm:$0xff]  ;;  %v730_v1 = vmov 0   ;;  %v231_v2 = vld [vmem:[%s916_s2] sm:$0xff]  ;;  %s923_s12 = smov (!%p191_p4, %s720_s12), 1  ;;  %v234_v7 = vld [vmem:[%s916_s2 + $0x18] sm:$0xff]  ;;  %vm299_vm0 = vcmask 261120  }
   0xd   : > { %640 = vset.pattern.permute.xlu1 %v730_v1  ;;  %639 = vset.pattern.permute.xlu0 %v730_v1  ;;  %v235_v3 = vld [vmem:[%s916_s2 + $0x20] sm:$0xff]  ;;  %s604_s22 = sshll.u32 %s923_s12, 6  ;;  %v232_v15 = vld [vmem:[%s916_s2 + $0x8] sm:$0xff]  ;;  %v608_v20 = vld [vmem:[%s915_s1 + $0x10] sm:$0xff]  ;;  %s605_s21 = sshll.u32 %s923_s12, 7 }
   0xe   : > { %251 = vperm.xlu1 %640, %v233_v0   ;;  %241 = vperm.xlu0 %639, %v231_v2   ;;  %s198_s25 = scalar_lea.vmem %s914_s0, %s604_s22  ;;  %v236_v17 = vld [vmem:[%s916_s2 + $0x28] sm:$0xff]  ;;  %v606_v19 = vld [vmem:[%s915_s1] sm:$0xff]  ;;  %v238_v21 = vld [vmem:[%s916_s2 + $0x38] sm:$0xff]  ;;  %s853_s24 = scalar_lea.vmem %s917_s3, %s605_s21 }
   0xf   : > { %641 = vset.pattern.permute.xlu2 %v730_v1  ;;  %v215_v4 = vld [vmem:[%s198_s25 + $0x20] sm:$0xff]  ;;  %v217_v5 = vld [vmem:[%s198_s25 + $0x30] sm:$0xff]  ;;  %v216_v6 = vld [vmem:[%s198_s25 + $0x28] sm:$0xff] }
  0x10   : > { %261 = vperm.xlu2 %641, %v235_v3   ;;  %v221_v8 = vpack.c.bf16 %v217_v5, %v215_v4  ;;  %v218_v9 = vld [vmem:[%s198_s25 + $0x38] sm:$0xff]  ;;  %v211_v10 = vld [vmem:[%s198_s25] sm:$0xff]  ;;  %v213_v11 = vld [vmem:[%s198_s25 + $0x10] sm:$0xff] }
  0x11   : > { %v222_v12 = vpack.c.bf16 %v218_v9, %v216_v6  ;;  %v212_v13 = vld [vmem:[%s198_s25 + $0x8] sm:$0xff]  ;;  %v214_v14 = vld [vmem:[%s198_s25 + $0x18] sm:$0xff]  ;;  %v219_v16 = vpack.c.bf16 %v213_v11, %v211_v10  ;;  %v237_v22 = vld [vmem:[%s916_s2 + $0x30] sm:$0xff] }
  0x12   : > { %318 = vmatpush.bf16.msra.mxu0 %v221_v8  ;;  %610 = vmatpush.bf16.msra.mxu2 %v221_v8  ;;  %v220_v18 = vpack.c.bf16 %v214_v14, %v212_v13  ;;  %v607_v23 = vld [vmem:[%s915_s1 + $0x8] sm:$0xff]  ;;  %v609_v24 = vld [vmem:[%s915_s1 + $0x18] sm:$0xff] }
  0x13   : > { %347 = vmatpush.bf16.msra.mxu1 %v222_v12  ;;  %612 = vmatpush.bf16.msra.mxu3 %v222_v12 }
  0x16   : > { %256 = vperm.xlu1 %640, %v234_v7   ;;  %246 = vperm.xlu0 %639, %v232_v15  }
  0x17   : > { %319 = vmatpush.bf16.msra.mxu0 %v219_v16  ;;  %611 = vmatpush.bf16.msra.mxu2 %v219_v16 }
  0x18   : > { %266 = vperm.xlu2 %641, %v236_v17   ;;  %348 = vmatpush.bf16.msra.mxu1 %v220_v18 }
  0x19   : > { %613 = vmatpush.bf16.msra.mxu3 %v220_v18 }
  0x1a   : > { %594 = vmatmul.msk.bf16.vlgmr.msra.gmra.mxu0 %vm299_vm0, %v606_v19  ;;  %596 = vmatmul.msk.bf16.vlgmr.msra.gmra.mxu2 %vm299_vm0, %v608_v20 }
  0x1b   : > { %598 = vmatmul.msk.bf16.vlgmr.msra.gmra.mxu1 %vm299_vm0, %v606_v19 }
  0x1c   : > { %600 = vmatmul.msk.bf16.vlgmr.msra.gmra.mxu3 %vm299_vm0, %v608_v20 }
  0x1e   : > { %276 = vperm.xlu1 %640, %v238_v21   ;;  %271 = vperm.xlu0 %639, %v237_v22  }
  0x2a   : > { %595 = vmatmul.msk.bf16.gmra.mxu0 %vm299_vm0, %v607_v23  ;;  %597 = vmatmul.msk.bf16.gmra.mxu2 %vm299_vm0, %v609_v24 }
  0x2b   : > { %599 = vmatmul.msk.bf16.gmra.mxu1 %vm299_vm0, %v607_v23 }
  0x2c   : > { %601 = vmatmul.msk.bf16.gmra.mxu3 %vm299_vm0, %v609_v24 }
  0x6a   : > { %v262_v30 = vpop.permute.xlu2 %261 }
  0x72   : > { %v267_v51 = vpop.permute.xlu2 %266 }
  0x80   : > { %v242_v25 = vpop.permute.xlu0 %241  ;;  %v252_v44 = vpop.permute.xlu1 %251 }
  0x88   : > { %v247_v38 = vpop.permute.xlu0 %246  ;;  %v257_v8 = vpop.permute.xlu1 %256 }
  0x90   : > { %v272_v16 = vpop.permute.xlu0 %271 }
  0x97   : > { %v321_v26 = vpop.f32.mrf.mxu0 }
  0x98   : > { %v819_v27 = vadd.f32 %v321_v26, %v242_v25  ;;  %v350_v28 = vpop.f32.mrf.mxu1 }
  0x99   : > { %v821_v29 = vadd.f32 %v350_v28, %v242_v25 }
  0x9a   : > { %v370_v31 = vsub.f32 0.0, %v819_v27 }
  0x9b   : > { %v371_v32 = vsub.f32 0.0, %v821_v29 }
  0x9c   : > { %v386_v33 = vmul.f32 1.442695, %v370_v31 }
  0x9d   : > { %v388_v34 = vmul.f32 1.442695, %v371_v32  ;;  %v331_v35 = vpop.f32.mrf.mxu2 }
  0x9e   : > { %642 = vpow2.f32 %v386_v33  ;;  %v825_v36 = vadd.f32 %v331_v35, %v262_v30 }
  0x9f   : > { %v360_v37 = vpop.f32.mrf.mxu3  ;;  %644 = vpow2.f32 %v388_v34  ;;  %v323_v40 = vpop.f32.mrf.mxu0 }
  0xa0   : > { %v827_v39 = vadd.f32 %v360_v37, %v262_v30  ;;  %v378_v41 = vsub.f32 0.0, %v825_v36  ;;  %v830_v42 = vadd.f32 %v323_v40, %v247_v38  ;;  %v352_v43 = vpop.f32.mrf.mxu1 }
  0xa1   : > { %v833_v46 = vadd.f32 %v352_v43, %v247_v38 }
  0xa2   : > { %v379_v45 = vsub.f32 0.0, %v827_v39  ;;  %v402_v47 = vmul.f32 1.442695, %v378_v41  ;;  %v372_v48 = vsub.f32 0.0, %v830_v42 }
  0xa3   : > { %v373_v50 = vsub.f32 0.0, %v833_v46 }
  0xa4   : > { %v404_v49 = vmul.f32 1.442695, %v379_v45  ;;  %v643_v52 = vpop.eup %642  ;;  %646 = vpow2.f32 %v402_v47  ;;  %v390_v53 = vmul.f32 1.442695, %v372_v48 }
  0xa5   : > { %v645_v54 = vpop.eup %644  ;;  %v418_v55 = vadd.f32 1.0, %v643_v52  ;;  %v392_v56 = vmul.f32 1.442695, %v373_v50  ;;  %v333_v57 = vpop.f32.mrf.mxu2 }
  0xa6   : > { %648 = vpow2.f32 %v404_v49  ;;  %v419_v58 = vadd.f32 1.0, %v645_v54  ;;  %v837_v59 = vadd.f32 %v333_v57, %v267_v51  ;;  %v277_v50 = vpop.permute.xlu1 %276 }
  0xa7   : > { %650 = vpow2.f32 %v390_v53  ;;  %v362_v60 = vpop.f32.mrf.mxu3  ;;  %v326_v62 = vpop.f32.mrf.mxu0 }
  0xa8   : > { %652 = vrcp.f32 %v418_v55  ;;  %v839_v61 = vadd.f32 %v362_v60, %v267_v51  ;;  %v380_v63 = vsub.f32 0.0, %v837_v59  ;;  %v842_v0 = vadd.f32 %v326_v62, %v252_v44  ;;  %v355_v1 = vpop.f32.mrf.mxu1 }
  0xa9   : > { %654 = vrcp.f32 %v419_v58  ;;  %v845_v3 = vadd.f32 %v355_v1, %v252_v44 }
  0xaa   : > { %656 = vpow2.f32 %v392_v56  ;;  %v381_v2 = vsub.f32 0.0, %v839_v61  ;;  %v647_v4 = vpop.eup %646  ;;  %v406_v5 = vmul.f32 1.442695, %v380_v63  ;;  %v374_v6 = vsub.f32 0.0, %v842_v0 }
  0xab   : > { %v426_v9 = vadd.f32 1.0, %v647_v4  ;;  %v375_v10 = vsub.f32 0.0, %v845_v3 }
  0xac   : > { %v649_v7 = vpop.eup %648  ;;  %658 = vpow2.f32 %v406_v5  ;;  %v408_v13 = vmul.f32 1.442695, %v381_v2  ;;  %v394_v17 = vmul.f32 1.442695, %v374_v6 }
  0xad   : > { %v651_v11 = vpop.eup %650  ;;  %v427_v12 = vadd.f32 1.0, %v649_v7  ;;  %660 = vrcp.f32 %v426_v9  ;;  %v336_v18 = vpop.f32.mrf.mxu2  ;;  %v396_v25 = vmul.f32 1.442695, %v375_v10 }
  0xae   : > { %v653_v14 = vpop.eup %652  ;;  %v420_v15 = vadd.f32 1.0, %v651_v11  ;;  %v856_v21 = vadd.f32 %v336_v18, %v272_v16 }
  0xaf   : > { %v655_v19 = vpop.eup %654  ;;  %v450_v20 = vmul.f32 %v653_v14, %v819_v27  ;;  %662 = vrcp.f32 %v427_v12  ;;  %v365_v22 = vpop.f32.mrf.mxu3 }
  0xb0   : > { %v657_v23 = vpop.eup %656  ;;  %v451_v24 = vmul.f32 %v655_v19, %v821_v29  ;;  %664 = vrcp.f32 %v420_v15  ;;  %v859_v26 = vadd.f32 %v365_v22, %v272_v16  ;;  %v328_v28 = vpop.f32.mrf.mxu0  ;;  %v382_v31 = vsub.f32 0.0, %v856_v21 }
  0xb1   : > { %466 = vst [vmem:[%s853_s24] sm:$0xff] %v450_v20  ;;  %v421_v30 = vadd.f32 1.0, %v657_v23  ;;  %666 = vpow2.f32 %v408_v13  ;;  %v863_v32 = vadd.f32 %v328_v28, %v257_v8  ;;  %v357_v27 = vpop.f32.mrf.mxu1 }
  0xb2   : > { %467 = vst [vmem:[%s853_s24 + $0x8] sm:$0xff] %v451_v24  ;;  %668 = vpow2.f32 %v394_v17  ;;  %v383_v33 = vsub.f32 0.0, %v859_v26  ;;  %v867_v34 = vadd.f32 %v357_v27, %v257_v8  ;;  %v659_v29 = vpop.eup %658  ;;  %v410_v35 = vmul.f32 1.442695, %v382_v31 }
  0xb3   : > { %670 = vrcp.f32 %v421_v30  ;;  %v376_v37 = vsub.f32 0.0, %v863_v32  ;;  %v661_v38 = vpop.eup %660  ;;  %v428_v40 = vadd.f32 1.0, %v659_v29 }
  0xb4   : > { %672 = vpow2.f32 %v396_v25  ;;  %v412_v41 = vmul.f32 1.442695, %v383_v33  ;;  %v377_v43 = vsub.f32 0.0, %v867_v34  ;;  %v458_v45 = vmul.f32 %v661_v38, %v825_v36 }
  0xb5   : > { %v663_v44 = vpop.eup %662  ;;  %674 = vpow2.f32 %v410_v35  ;;  %v398_v47 = vmul.f32 1.442695, %v376_v37  ;;  %v338_v52 = vpop.f32.mrf.mxu2 }
  0xb6   : > { %v665_v48 = vpop.eup %664  ;;  %v459_v49 = vmul.f32 %v663_v44, %v827_v39  ;;  %676 = vrcp.f32 %v428_v40  ;;  %v400_v51 = vmul.f32 1.442695, %v377_v43  ;;  %474 = vst [vmem:[%s853_s24 + $0x40] sm:$0xff] %v458_v45  ;;  %v875_v55 = vadd.f32 %v338_v52, %v277_v50 }
  0xb7   : > { %v667_v53 = vpop.eup %666  ;;  %v452_v54 = vmul.f32 %v665_v48, %v830_v42  ;;  %678 = vpow2.f32 %v412_v41  ;;  %v367_v56 = vpop.f32.mrf.mxu3 }
  0xb8   : > { %v669_v36 = vpop.eup %668  ;;  %475 = vst [vmem:[%s853_s24 + $0x48] sm:$0xff] %v459_v49  ;;  %v429_v57 = vadd.f32 1.0, %v667_v53  ;;  %680 = vpow2.f32 %v398_v47  ;;  %v878_v58 = vadd.f32 %v367_v56, %v277_v50  ;;  %v384_v62 = vsub.f32 0.0, %v875_v55 }
  0xb9   : > { %v671_v39 = vpop.eup %670  ;;  %468 = vst [vmem:[%s853_s24 + $0x10] sm:$0xff] %v452_v54  ;;  %v422_v60 = vadd.f32 1.0, %v669_v36  ;;  %682 = vpow2.f32 %v400_v51 }
  0xba   : > { %v673_v63 = vpop.eup %672  ;;  %v453_v42 = vmul.f32 %v671_v39, %v833_v46  ;;  %684 = vrcp.f32 %v429_v57  ;;  %v414_v4 = vmul.f32 1.442695, %v384_v62  ;;  %v385_v5 = vsub.f32 0.0, %v878_v58 }
  0xbb   : > { %v675_v1 = vpop.eup %674  ;;  %686 = vrcp.f32 %v422_v60  ;;  %v423_v2 = vadd.f32 1.0, %v673_v63 }
  0xbc   : > { %v677_v6 = vpop.eup %676  ;;  %469 = vst [vmem:[%s853_s24 + $0x18] sm:$0xff] %v453_v42  ;;  %v430_v7 = vadd.f32 1.0, %v675_v1  ;;  %v416_v13 = vmul.f32 1.442695, %v385_v5 }
  0xbd   : > { %v679_v8 = vpop.eup %678  ;;  %v460_v9 = vmul.f32 %v677_v6, %v837_v59  ;;  %688 = vrcp.f32 %v423_v2 }
  0xbe   : > { %v681_v10 = vpop.eup %680  ;;  %690 = vrcp.f32 %v430_v7  ;;  %v431_v11 = vadd.f32 1.0, %v679_v8 }
  0xbf   : > { %v683_v46 = vpop.eup %682  ;;  %476 = vst [vmem:[%s853_s24 + $0x50] sm:$0xff] %v460_v9  ;;  %v424_v12 = vadd.f32 1.0, %v681_v10  ;;  %692 = vpow2.f32 %v414_v4 }
  0xc0   : > { %v685_v14 = vpop.eup %684  ;;  %694 = vrcp.f32 %v431_v11  ;;  %v425_v15 = vadd.f32 1.0, %v683_v46 }
  0xc1   : > { %v687_v16 = vpop.eup %686  ;;  %v461_v17 = vmul.f32 %v685_v14, %v839_v61  ;;  %696 = vrcp.f32 %v424_v12 }
  0xc2   : > { %v454_v59 = vmul.f32 %v687_v16, %v842_v0  ;;  %698 = vrcp.f32 %v425_v15 }
  0xc3   : > { %v689_v18 = vpop.eup %688  ;;  %477 = vst [vmem:[%s853_s24 + $0x58] sm:$0xff] %v461_v17  ;;  %700 = vpow2.f32 %v416_v13 }
  0xc4   : > { %v691_v19 = vpop.eup %690  ;;  %470 = vst [vmem:[%s853_s24 + $0x20] sm:$0xff] %v454_v59  ;;  %v455_v20 = vmul.f32 %v689_v18, %v845_v3 }
  0xc5   : > { %v693_v22 = vpop.eup %692  ;;  %v462_v23 = vmul.f32 %v691_v19, %v856_v21 }
  0xc6   : > { %v695_v24 = vpop.eup %694  ;;  %471 = vst [vmem:[%s853_s24 + $0x28] sm:$0xff] %v455_v20  ;;  %v432_v61 = vadd.f32 1.0, %v693_v22 }
  0xc7   : > { %v697_v25 = vpop.eup %696  ;;  %478 = vst [vmem:[%s853_s24 + $0x60] sm:$0xff] %v462_v23  ;;  %v463_v0 = vmul.f32 %v695_v24, %v859_v26 }
  0xc8   : > { %v699_v28 = vpop.eup %698  ;;  %v456_v30 = vmul.f32 %v697_v25, %v863_v32  ;;  %702 = vrcp.f32 %v432_v61 }
  0xc9   : > { %v701_v31 = vpop.eup %700  ;;  %479 = vst [vmem:[%s853_s24 + $0x68] sm:$0xff] %v463_v0  ;;  %v457_v3 = vmul.f32 %v699_v28, %v867_v34 }
  0xca   : > { %472 = vst [vmem:[%s853_s24 + $0x30] sm:$0xff] %v456_v30  ;;  %v433_v27 = vadd.f32 1.0, %v701_v31 }
  0xcb   : > { %473 = vst [vmem:[%s853_s24 + $0x38] sm:$0xff] %v457_v3 }
  0xcc   : > { %704 = vrcp.f32 %v433_v27 }
  0xce   : > { %v703_v21 = vpop.eup %702 }
  0xcf   : > { %v464_v33 = vmul.f32 %v703_v21, %v875_v55 }
  0xd1   : > { %480 = vst [vmem:[%s853_s24 + $0x70] sm:$0xff] %v464_v33 }
  0xd2   : > { %v705_v29 = vpop.eup %704 }
  0xd3   : > { %v465_v26 = vmul.f32 %v705_v29, %v878_v58 }
  0xd5   : > { %481 = vst [vmem:[%s853_s24 + $0x78] sm:$0xff] %v465_v26 }
  0xd6 PF: > { %s13_s14 = sadd.s32 1, %s728_s14   ;;  %s918_s12 = smov %s724_s13 }
  0xd7   : > { %p10_p5 = scmp.ge.s32.totalorder %s13_s14, 4   ;;  %s919_s13 = smov %s921_s15 }
  0xd9   :  { %12 = sbr.rel (!%p10_p5) target bundleno = 2 (0x2), region = 62 }

</bundles_post_ra>
